<compile_context>
chip_gen: v5e
topology: v5e:2x2
jax: 0.10.0
libtpu: 0.0.40
codegen_flags: <defaults>
</compile_context>

<pallas_src>
import functools
import math

import numpy as np
import jax
import jax.numpy as jnp
from jax.experimental import pallas as pl
from jax.experimental.pallas import tpu as pltpu


# ----------------------------------------------------------------------------- #
# tiling helper
# ----------------------------------------------------------------------------- #
def _pick_tile(nhw_pad, cap=4096):
    """Largest multiple of 128 that divides nhw_pad and is <= cap."""
    best = 128
    k = nhw_pad // 128
    for d in range(1, k + 1):
        if k % d == 0 and d * 128 <= cap:
            best = d * 128
    return best


# ----------------------------------------------------------------------------- #
# Pallas kernel 1: pred-corner decode (sigmoid on x0,y0 only; grid add; 1/dim multiply)
# ----------------------------------------------------------------------------- #
def _decode_kernel(raw_ref, grid_ref, corners_ref, *, inv_w, inv_h):
    raw = raw_ref[...]                                    # (19+nC, TILE)
    sig01 = 1.0 / (1.0 + jnp.exp(-raw[0:2, :]))           # sigmoid only on x0, y0
    act18 = jnp.concatenate([sig01, raw[2:18, :]], axis=0)  # (18, TILE)

    gx = grid_ref[0:1, :]                                 # (1, TILE) cell column i
    gy = grid_ref[1:2, :]                                 # (1, TILE) cell row j
    row = jax.lax.broadcasted_iota(jnp.int32, (18, 1), 0)
    is_x = (row % 2) == 0                                 # (18, 1)
    grid18 = jnp.where(is_x, gx, gy)                      # (18, TILE)
    inv18 = jnp.where(is_x, jnp.float32(inv_w), jnp.float32(inv_h))  # (18, 1)
    corners_ref[...] = (act18 + grid18) * inv18


def decode_pallas(raw3, grid_tbl, nH, nW, tile):
    nBA, C, nHWp = raw3.shape
    n_t = nHWp // tile
    N_pad = nBA * nHWp
    kernel = functools.partial(_decode_kernel, inv_w=1.0 / nW, inv_h=1.0 / nH)
    corners = pl.pallas_call(
        kernel,
        grid=(nBA, n_t),
        in_specs=[
            pl.BlockSpec((None, C, tile), lambda ba, t: (ba, 0, t)),
            pl.BlockSpec((2, tile), lambda ba, t: (0, t)),
        ],
        out_specs=pl.BlockSpec((18, tile), lambda ba, t: (0, ba * n_t + t)),
        out_shape=jax.ShapeDtypeStruct((18, N_pad), jnp.float32),
        compiler_params=pltpu.CompilerParams(
            dimension_semantics=("parallel", "parallel")),
    )(raw3, grid_tbl)
    return corners


# ----------------------------------------------------------------------------- #
# Pallas kernel 2: masked MSE losses + proposal count (tiled reduction over cells)
# ----------------------------------------------------------------------------- #
def _loss_kernel(raw_ref, tcoords_ref, cmask_ref, cfmask_ref, out_ref, acc_ref,
                 *, coord_scale):
    g = pl.program_id(0)
    nsteps = pl.num_programs(0)

    @pl.when(g == 0)
    def _():
        acc_ref[...] = jnp.zeros_like(acc_ref)

    raw = raw_ref[...]                                    # (19+nC, TILE)
    tgt = tcoords_ref[...]                                # (19, TILE)
    cm = cmask_ref[...]                                   # (1, TILE)
    cfm = cfmask_ref[...]                                 # (1, TILE), already sqrt'd on host

    # re-derive activations (3 sigmoid rows only) instead of reading a (19,N) coords slab
    sig01 = 1.0 / (1.0 + jnp.exp(-raw[0:2, :]))
    coords18 = jnp.concatenate([sig01, raw[2:18, :]], axis=0)   # (18, TILE)
    conf = 1.0 / (1.0 + jnp.exp(-raw[18:19, :]))                # (1, TILE)

    d = (coords18 - tgt[:18, :]) * cm                     # (18, TILE)
    per_row = jnp.sum(d * d, axis=1, keepdims=True)       # (18, 1)

    dconf = (conf - tgt[18:19, :]) * cfm
    conf_sse = jnp.sum(dconf * dconf, axis=1, keepdims=True)            # (1, 1)
    n_prop = jnp.sum((conf > 0.25).astype(jnp.float32), axis=1, keepdims=True)  # (1, 1)

    acc_ref[...] += jnp.concatenate([per_row, conf_sse, n_prop], axis=0)  # (20, 1)

    @pl.when(g == nsteps - 1)
    def _():
        acc = acc_ref[...]                                # (20, 1)
        row = jax.lax.broadcasted_iota(jnp.int32, (18, 1), 0)
        is_x = (row % 2) == 0
        coord_rows = acc[:18, :]
        loss_x = coord_scale * 0.5 * jnp.sum(jnp.where(is_x, coord_rows, 0.0))
        loss_y = coord_scale * 0.5 * jnp.sum(jnp.where(is_x, 0.0, coord_rows))
        loss_conf = 0.5 * jnp.sum(acc[18:19, :])
        nprop = jnp.sum(acc[19:20, :])
        total = loss_x + loss_y + loss_conf

        col = jax.lax.broadcasted_iota(jnp.int32, out_ref.shape, 1)
        out = (jnp.where(col == 0, loss_x, 0.0)
               + jnp.where(col == 1, loss_y, 0.0)
               + jnp.where(col == 2, loss_conf, 0.0)
               + jnp.where(col == 3, total, 0.0)
               + jnp.where(col == 4, nprop, 0.0))
        out_ref[...] = out


def loss_pallas(raw3, tcoords, coord_mask, conf_mask_sqrt, coord_scale, tile):
    nBA, C, nHWp = raw3.shape
    n_t = nHWp // tile
    nsteps = nBA * n_t
    kernel = functools.partial(_loss_kernel, coord_scale=float(coord_scale))
    out = pl.pallas_call(
        kernel,
        grid=(nsteps,),
        in_specs=[
            pl.BlockSpec((None, C, tile), lambda g: (g // n_t, 0, g % n_t)),
            pl.BlockSpec((19, tile), lambda g: (0, g)),
            pl.BlockSpec((1, tile), lambda g: (0, g)),
            pl.BlockSpec((1, tile), lambda g: (0, g)),
        ],
        out_specs=pl.BlockSpec((1, 8), lambda g: (0, 0)),
        out_shape=jax.ShapeDtypeStruct((1, 8), jnp.float32),
        scratch_shapes=[pltpu.VMEM((20, 1), jnp.float32)],
        compiler_params=pltpu.CompilerParams(
            dimension_semantics=("arbitrary",)),
    )(raw3, tcoords, coord_mask, conf_mask_sqrt)
    return out


# ----------------------------------------------------------------------------- #
# Host-side build_targets (faithful numpy port of the PyTorch/CPU reference)
# ----------------------------------------------------------------------------- #
def _corner_confidences9(pr_corners, gt_corners, th=80.0, sharpness=2.0,
                         im_width=640.0, im_height=480.0):
    # pr_corners, gt_corners: (18, nAnchors)
    nA = pr_corners.shape[1]
    dist = gt_corners - pr_corners
    dist = dist.T.reshape(nA, 9, 2).copy()
    dist[:, :, 0] *= im_width
    dist[:, :, 1] *= im_height
    eps = 1e-5
    dist = np.sqrt(np.sum(dist ** 2, axis=2))                 # (nA, 9)
    mask = (dist < th).astype(np.float32)
    conf = np.exp(sharpness * (1.0 - dist / th)) - 1.0
    conf0 = math.exp(sharpness) - 1.0 + eps
    conf = mask * (conf / conf0)
    return conf.mean(axis=1)                                  # (nA,)


def _corner_confidence9(gt_corners, pr_corners, th=80.0, sharpness=2.0,
                        im_width=640.0, im_height=480.0):
    dist = np.asarray(gt_corners, np.float32) - np.asarray(pr_corners, np.float32)
    dist = dist.reshape(9, 2).copy()
    dist[:, 0] *= im_width
    dist[:, 1] *= im_height
    eps = 1e-5
    dist = np.sqrt(np.sum(dist ** 2, axis=1))
    mask = (dist < th).astype(np.float32)
    conf = np.exp(sharpness * (1.0 - dist / th)) - 1.0
    conf0 = math.exp(sharpness) - 1.0 + eps
    conf = mask * (conf / conf0)
    return float(conf.mean())


def build_targets_np(pred_corners, target, num_anchors, nH, nW,
                     noobject_scale, object_scale, sil_thresh, seen):
    # TODO(synk): the per-batch anchor-confidence pass could be moved into a small
    # Pallas/VPU kernel; kept on host here to match the reference CPU build_targets path.
    nB = target.shape[0]
    nA = num_anchors
    conf_mask = np.ones((nB, nA, nH, nW), np.float32) * noobject_scale
    coord_mask = np.zeros((nB, nA, nH, nW), np.float32)
    cls_mask = np.zeros((nB, nA, nH, nW), np.float32)
    txy = np.zeros((18, nB, nA, nH, nW), np.float32)   # [tx0,ty0,...,tx8,ty8]
    tconf = np.zeros((nB, nA, nH, nW), np.float32)
    tcls = np.zeros((nB, nA, nH, nW), np.float32)
    nAnchors = nA * nH * nW
    nPixels = nH * nW

    for b in range(nB):
        cur_pred = pred_corners[b * nAnchors:(b + 1) * nAnchors].T   # (18, nAnchors)
        cur_confs = np.zeros(nAnchors, np.float32)
        for t in range(50):
            if target[b, t * 21 + 1] == 0:
                break
            g = target[b, t * 21 + 1: t * 21 + 19].astype(np.float32)
            cur_gt = np.tile(g.reshape(18, 1), (1, nAnchors))
            cur_confs = np.maximum(cur_confs, _corner_confidences9(cur_pred, cur_gt))
        sel = (cur_confs.reshape(nA, nH, nW) > sil_thresh)
        conf_mask[b][sel] = 0.0

    # (seen < -1) branch of the reference is dead for seen=0; skipped.

    nGT = 0
    nCorrect = 0
    for b in range(nB):
        for t in range(50):
            if target[b, t * 21 + 1] == 0:
                break
            nGT += 1
            best_n = 0
            gi0 = int(target[b, t * 21 + 1] * nW)
            gj0 = int(target[b, t * 21 + 2] * nH)
            gt_box = target[b, t * 21 + 1: t * 21 + 19].astype(np.float32)
            pred_box = pred_corners[b * nAnchors + best_n * nPixels + gj0 * nW + gi0]
            conf = _corner_confidence9(gt_box, pred_box)
            coord_mask[b, best_n, gj0, gi0] = 1.0
            cls_mask[b, best_n, gj0, gi0] = 1.0
            conf_mask[b, best_n, gj0, gi0] = object_scale
            for k in range(9):
                txy[2 * k, b, best_n, gj0, gi0] = target[b, t * 21 + 1 + 2 * k] * nW - gi0
                txy[2 * k + 1, b, best_n, gj0, gi0] = target[b, t * 21 + 2 + 2 * k] * nH - gj0
            tconf[b, best_n, gj0, gi0] = conf
            tcls[b, best_n, gj0, gi0] = target[b, t * 21]
            if conf > 0.5:
                nCorrect += 1

    return nGT, nCorrect, coord_mask, conf_mask, cls_mask, txy, tconf, tcls


# ----------------------------------------------------------------------------- #
# RegionLoss wrapper
# ----------------------------------------------------------------------------- #
class RegionLossPallas:
    def __init__(self, num_classes=0, anchors=(), num_anchors=1):
        self.num_classes = num_classes
        self.anchors = list(anchors)
        self.num_anchors = num_anchors
        self.anchor_step = len(self.anchors) // num_anchors if num_anchors else 0
        self.coord_scale = 1
        self.noobject_scale = 1
        self.object_scale = 5
        self.class_scale = 1
        self.thresh = 0.6
        self.seen = 0

    def forward(self, output, target):
        nB = output.shape[0]
        nA = self.num_anchors
        nC = self.num_classes
        nH = output.shape[2]
        nW = output.shape[3]
        nBA = nB * nA
        C = 19 + nC
        nHW = nH * nW
        nHW_pad = ((nHW + 127) // 128) * 128
        tile = _pick_tile(nHW_pad)
        N_real = nBA * nHW
        N_pad = nBA * nHW_pad

        # ---- glue: free reshape (no XLA transpose pass) ----
        raw3 = output.reshape(nBA, C, nHW).astype(jnp.float32)
        if nHW_pad != nHW:
            pad = jnp.zeros((nBA, C, nHW_pad - nHW), jnp.float32)
            pad = pad.at[:, 18, :].set(-30.0)   # padded conf -> sigmoid ~ 0, never a proposal
            raw3 = jnp.concatenate([raw3, pad], axis=2)

        # static (2, nHW_pad) grid table (row 0 = cell column i, row 1 = cell row j)
        gx = jnp.tile(jnp.arange(nW, dtype=jnp.float32), nH)
        gy = jnp.repeat(jnp.arange(nH, dtype=jnp.float32), nW)
        grid_tbl = jnp.stack([gx, gy], axis=0)
        if nHW_pad != nHW:
            grid_tbl = jnp.concatenate(
                [grid_tbl, jnp.zeros((2, nHW_pad - nHW), jnp.float32)], axis=1)

        # ---- Pallas kernel 1: pred_corners ----
        corners = decode_pallas(raw3, grid_tbl, nH, nW, tile)

        # ---- host build_targets (data-dependent loops, matches reference CPU path) ----
        corners_np = np.asarray(corners).reshape(18, nBA, nHW_pad)[:, :, :nHW]
        pred_corners_np = np.ascontiguousarray(corners_np.reshape(18, N_real).T)  # (N, 18)
        target_np = np.asarray(target)
        (nGT, nCorrect, coord_mask, conf_mask, cls_mask, txy, tconf, tcls) = \
            build_targets_np(pred_corners_np, target_np, nA, nH, nW,
                             self.noobject_scale, self.object_scale,
                             self.thresh, self.seen)
        # TODO(synk): loss_cls is identically 0 in the reference forward (disabled branch);
        # tcls / cls_mask-gathered class logits are therefore not consumed here.

        def _pad_cols(a):  # (rows, N_real) -> (rows, N_pad), zero-padded per (b,a) slab
            rows = a.shape[0]
            a = a.reshape(rows, nBA, nHW)
            if nHW_pad != nHW:
                a = np.concatenate(
                    [a, np.zeros((rows, nBA, nHW_pad - nHW), np.float32)], axis=2)
            return np.ascontiguousarray(a.reshape(rows, nBA * nHW_pad))

        tcoords_np = _pad_cols(np.concatenate(
            [txy.reshape(18, N_real), tconf.reshape(1, N_real)], axis=0))
        coord_mask_np = _pad_cols(coord_mask.reshape(1, N_real).astype(np.float32))
        conf_mask_sqrt_np = _pad_cols(
            np.sqrt(conf_mask).reshape(1, N_real).astype(np.float32))  # sqrt on host

        tcoords = jnp.asarray(tcoords_np, dtype=jnp.float32)
        coord_mask_j = jnp.asarray(coord_mask_np, dtype=jnp.float32)
        conf_mask_j = jnp.asarray(conf_mask_sqrt_np, dtype=jnp.float32)

        # ---- Pallas kernel 2: tiled masked-MSE reductions ----
        out = loss_pallas(raw3, tcoords, coord_mask_j, conf_mask_j,
                          self.coord_scale, tile)
        out_np = np.asarray(out)
        loss_x, loss_y, loss_conf, loss_total, n_prop = (
            float(out_np[0, 0]), float(out_np[0, 1]), float(out_np[0, 2]),
            float(out_np[0, 3]), int(round(float(out_np[0, 4]))))

        print('%d: nGT %d, recall %d, proposals %d, loss: x %f, y %f, conf %f, total %f' %
              (self.seen, nGT, nCorrect, n_prop, loss_x, loss_y, loss_conf, loss_total))
        return out[0, 3]


# ----------------------------------------------------------------------------- #
if __name__ == "__main__":
    key = jax.random.PRNGKey(0)
    nB, nA, nC, nH, nW = 2, 1, 1, 16, 16
    anchors = [0.5, 0.5]

    k_out, k_tgt = jax.random.split(key)
    output = jax.random.normal(k_out, (nB, nA * (19 + nC), nH, nW), dtype=jnp.float32)

    # target layout: (nB, 50*21); per-object record = [class, 18 normalized corner coords, pads]
    target_np = np.zeros((nB, 50 * 21), dtype=np.float32)
    coord_vals = np.asarray(
        jax.random.uniform(k_tgt, (nB, 2, 18), minval=0.05, maxval=0.95, dtype=jnp.float32))
    for b in range(nB):
        for t in range(2):  # two valid ground-truth objects per batch element
            target_np[b, t * 21 + 0] = float(t % max(nC, 1))
            target_np[b, t * 21 + 1: t * 21 + 19] = coord_vals[b, t]
    target = jnp.asarray(target_np)

    region_loss = RegionLossPallas(num_classes=nC, anchors=anchors, num_anchors=nA)
    loss = region_loss.forward(output, target)
    jax.block_until_ready(loss)
    print("KERNEL_OK")
</pallas_src>

<mosaic_0001>
module attributes {stable_mosaic.version = 11 : i64} {
  func.func @_decode_kernel(%arg0: i32, %arg1: i32, %arg2: memref<1x20x256xf32, #tpu.memory_space<vmem>>, %arg3: memref<2x256xf32, #tpu.memory_space<vmem>>, %arg4: memref<18x256xf32, #tpu.memory_space<vmem>>) attributes {dimension_semantics = [#tpu.dimension_semantics<parallel>, #tpu.dimension_semantics<parallel>], iteration_bounds = array<i64: 2, 1>, scalar_prefetch = 0 : i64, scratch_operands = 0 : i64, tpu.core_type = #tpu.core_type<tc>, window_params = [{transform_indices = @transform_0, window_bounds = array<i64: 1, 20, 256>}, {transform_indices = @transform_1, window_bounds = array<i64: 2, 256>}, {transform_indices = @transform_2, window_bounds = array<i64: 18, 256>}]} {
    %c0 = arith.constant 0 : index
    %c0_0 = arith.constant 0 : index
    %c0_1 = arith.constant 0 : index
    %0 = vector.load %arg2[%c0, %c0_0, %c0_1] : memref<1x20x256xf32, #tpu.memory_space<vmem>>, vector<1x20x256xf32>
    %1 = vector.shape_cast %0 : vector<1x20x256xf32> to vector<20x256xf32>
    %2 = vector.extract_strided_slice %1 {offsets = [0, 0], sizes = [2, 256], strides = [1, 1]} : vector<20x256xf32> to vector<2x256xf32>
    %cst = arith.constant 0.000000e+00 : f32
    %3 = vector.broadcast %cst : f32 to vector<2x256xf32>
    %4 = arith.subf %3, %2 : vector<2x256xf32>
    %5 = math.exp %4 : vector<2x256xf32>
    %cst_2 = arith.constant 1.000000e+00 : f32
    %6 = vector.broadcast %cst_2 : f32 to vector<2x256xf32>
    %7 = arith.addf %6, %5 : vector<2x256xf32>
    %cst_3 = arith.constant 1.000000e+00 : f32
    %8 = vector.broadcast %cst_3 : f32 to vector<2x256xf32>
    %9 = arith.divf %8, %7 : vector<2x256xf32>
    %10 = vector.extract_strided_slice %1 {offsets = [2, 0], sizes = [16, 256], strides = [1, 1]} : vector<20x256xf32> to vector<16x256xf32>
    %11 = tpu.concatenate %9, %10 in 0 : vector<2x256xf32>, vector<16x256xf32> -> vector<18x256xf32>
    %c0_4 = arith.constant 0 : index
    %c0_5 = arith.constant 0 : index
    %12 = vector.load %arg3[%c0_4, %c0_5] : memref<2x256xf32, #tpu.memory_space<vmem>>, vector<1x256xf32>
    %c1 = arith.constant 1 : index
    %c0_6 = arith.constant 0 : index
    %13 = vector.load %arg3[%c1, %c0_6] : memref<2x256xf32, #tpu.memory_space<vmem>>, vector<1x256xf32>
    %14 = tpu.iota {dimensions = array<i32: 0>} : vector<18x1xi32>
    %c2_i32 = arith.constant 2 : i32
    %c0_i32 = arith.constant 0 : i32
    %15 = arith.cmpi eq, %c2_i32, %c0_i32 : i32
    %c1_i32 = arith.constant 1 : i32
    %16 = arith.select %15, %c1_i32, %c2_i32 : i32
    %17 = vector.broadcast %16 : i32 to vector<18x1xi32>
    %18 = arith.remsi %14, %17 : vector<18x1xi32>
    %c0_i32_7 = arith.constant 0 : i32
    %19 = vector.broadcast %c0_i32_7 : i32 to vector<18x1xi32>
    %20 = arith.cmpi ne, %18, %19 : vector<18x1xi32>
    %c0_i32_8 = arith.constant 0 : i32
    %21 = vector.broadcast %c0_i32_8 : i32 to vector<18x1xi32>
    %22 = arith.cmpi slt, %18, %21 : vector<18x1xi32>
    %c0_i32_9 = arith.constant 0 : i32
    %23 = arith.cmpi slt, %16, %c0_i32_9 : i32
    %24 = vector.broadcast %23 : i1 to vector<18x1xi1>
    %25 = vector.broadcast %24 : vector<18x1xi1> to vector<18x1xi1>
    %26 = arith.xori %22, %25 : vector<18x1xi1>
    %27 = arith.andi %26, %20 : vector<18x1xi1>
    %28 = vector.broadcast %16 : i32 to vector<18x1xi32>
    %29 = arith.addi %18, %28 : vector<18x1xi32>
    %30 = arith.select %27, %29, %18 : vector<18x1xi1>, vector<18x1xi32>
    %c0_i32_10 = arith.constant 0 : i32
    %31 = vector.broadcast %c0_i32_10 : i32 to vector<18x1xi32>
    %32 = arith.cmpi eq, %30, %31 : vector<18x1xi32>
    %33 = vector.shape_cast %32 : vector<18x1xi1> to vector<18x1xi1>
    %34 = vector.broadcast %33 : vector<18x1xi1> to vector<18x256xi1>
    %35 = vector.shape_cast %12 : vector<1x256xf32> to vector<1x256xf32>
    %36 = vector.broadcast %35 : vector<1x256xf32> to vector<18x256xf32>
    %37 = vector.shape_cast %13 : vector<1x256xf32> to vector<1x256xf32>
    %38 = vector.broadcast %37 : vector<1x256xf32> to vector<18x256xf32>
    %39 = arith.select %34, %36, %38 : vector<18x256xi1>, vector<18x256xf32>
    %cst_11 = arith.constant 6.250000e-02 : f32
    %cst_12 = arith.constant 6.250000e-02 : f32
    %40 = vector.broadcast %cst_11 : f32 to vector<18x1xf32>
    %41 = vector.broadcast %cst_12 : f32 to vector<18x1xf32>
    %42 = arith.select %32, %40, %41 : vector<18x1xi1>, vector<18x1xf32>
    %43 = arith.addf %11, %39 : vector<18x256xf32>
    %44 = vector.broadcast %42 : vector<18x1xf32> to vector<18x256xf32>
    %45 = arith.mulf %43, %44 : vector<18x256xf32>
    %c0_13 = arith.constant 0 : index
    %c0_14 = arith.constant 0 : index
    %46 = vector.load %arg4[%c0_13, %c0_14] : memref<18x256xf32, #tpu.memory_space<vmem>>, vector<18x256xf32>
    tpu.vector_store %arg4[%c0_13, %c0_14], %45 {strides = array<i32>} : memref<18x256xf32, #tpu.memory_space<vmem>>, vector<18x256xf32>,
    return
  }
  func.func @transform_0(%arg0: i32, %arg1: i32) -> (i32, i32, i32) {
    %c0_i32 = arith.constant 0 : i32
    %c0_i32_0 = arith.constant 0 : i32
    return %arg0, %c0_i32, %arg1 : i32, i32, i32
  }
  func.func @transform_1(%arg0: i32, %arg1: i32) -> (i32, i32) {
    %c0_i32 = arith.constant 0 : i32
    %c0_i32_0 = arith.constant 0 : i32
    return %c0_i32, %arg1 : i32, i32
  }
  func.func @transform_2(%arg0: i32, %arg1: i32) -> (i32, i32) {
    %c1_i32 = arith.constant 1 : i32
    %0 = arith.muli %arg0, %c1_i32 : i32
    %1 = arith.addi %0, %arg1 : i32
    %c0_i32 = arith.constant 0 : i32
    %c0_i32_0 = arith.constant 0 : i32
    return %c0_i32, %1 : i32, i32
  }
}

</mosaic_0001>

<bundles_post_ra>
// kernel: tpu_custom_call.1
= control target key start
LH: loop header
LB: loop body
LE: loop exit
PB: predicated region body
PF: predicated region fallthrough
CT: control target
= control target key end

     0   :  { %7 = vsyncpa [#allocation3], 0  ;;  %s774_s0 = inlined_call_operand.vmem [shape: f32[2,20,256], index: 0, kind: input, shape index: {}]   ;;  %s775_s1 = inlined_call_operand.vmem [shape: f32[2,256], index: 1, kind: input, shape index: {}]   ;;  %s776_s2 = inlined_call_operand.hbm [shape: f32[18,512], index: 2, kind: output, shape index: {}]  }
   0x1   :  { %9 = vsyncpa [#allocation3 + $0x1], 0  ;;  %s617_s9 = smov 0   ;;  %s619_s10 = smov 0  }
   0x2   :  { %s621_s11 = smov 0   ;;  %s623_s12 = smov 0  }
   0x3   :  { %s625_s13 = smov 0   ;;  %s627_s14 = smov 0  }
   0x4 LB: > { %s438_s15 = sadd.s32 4294967295, %s597_s14   ;;  %s439_s16 = sadd.s32 4294967294, %s597_s14   ;;  %s597_s14 = sphi %s627_s14, %s15_s14   ;;  %s593_s13 = sphi %s625_s13, %s785_s13   ;;  %s589_s12 = sphi %s623_s12, %s784_s12   ;;  %s585_s11 = sphi %s621_s11, %s783_s11   ;;  %s581_s10 = sphi %s619_s10, %s782_s10   ;;  %s577_s9 = sphi %s617_s9, %s781_s9  }
   0x5   : > { %s27_s17 = sadd.s32 1, %s593_s13  ;;  %s90_s18 = sadd.s32 1, %s585_s11 }
   0x6   : > { %p29_p0 = scmp.ge.s32.totalorder %s27_s17, 2  ;;  %p100_p1 = scmp.ne.s32.totalorder %s585_s11, %s581_s10 }
   0x7   : > { %p101_p2 = scmp.eq.s32.totalorder %s438_s15, 1  ;;  %p106_p3 = scmp.ne.s32.totalorder %s581_s10, %s577_s9 }
   0x8   : > { %s787_s17 = smov (%p29_p0, %s27_s17), 0  ;;  %p107_p5 = scmp.eq.s32.totalorder %s439_s16, 1 }
   0x9   : > { %p657_p4 = por %p101_p2, %p100_p1  ;;  %s87_s20 = ssub.s32 %s593_s13, %s787_s17 }
   0xa   : > { %p443_p6 = scmp.ge.s32.totalorder %s597_s14, 1  ;;  %p88_p7 = scmp.eq.s32.totalorder %s87_s20, 0 }
   0xb   : > { %p664_p8 = por %p107_p5, %p106_p3  ;;  %p147_p9 = scmp.lt.s32.totalorder %s597_s14, 3 }
   0xc   : > { %s670_s22 = scalar_select %p88_p7, %s585_s11, %s90_s18  }
   0xd   : > { %p148_p10 = pnand %p443_p6, %p147_p9 }
   0xe   : > { %p179_p11 = scmp.lt.s32.totalorder (!%p148_p10), %s589_s12, 1  ;;  %s175_s29 = sand.u32 (!%p148_p10), 1, %s581_s10  }
   0xf   : > { %151 = sbr.rel (%p148_p10) target bundleno = 67 (0x43), region = 28  ;;  %s450_s7 = sshll.u32 (!%p148_p10), %s589_s12, 4 }
  0x10   : > { %s451_s5 = smul.u32 (!%p148_p10), 48, %s175_s29  ;;  %s342_s16 = scalar_lea.hbm (!%p148_p10), %s776_s2, %s450_s7 }
  0x11   : > { %s345_s18 = sshll.u32 (!%p148_p10), %s342_s16, 4  ;;  %s330_s20 = scalar_lea.sflag (!%p148_p10), [#allocation3], %s175_s29  ;;  %s346_s18 = int_to_ptr.hbm [resolvable:$true] %s345_s18 }
  0x12   : > { %s712_s6 = scalar_lea.vmem (!%p148_p10), [#allocation2], %s451_s5  ;;  %s539_s27 = scalar_lea.hbm (!%p148_p10), %s776_s2, 96 }
  0x14   : > { %v246_v0 = vlaneseq  ;;  %s180_s23 = scalar_select %p179_p11, %s589_s12, 1  ;;  %v243_v2 = vld [vmem:[%s775_s1] ss:$2 sm:$0x3]  ;;  %vm240_vm10 = vcmask 1041408  }
  0x15   : > { %v445_v3 = vld [vmem:[%s775_s1 + $0x1] ss:$2 sm:$0x3]  ;;  %v690_v7 = vperm.slane %v243_v2, 0  ;;  %v696_v10 = vperm.slane %v243_v2, 1  ;;  %s343_s12 = sshll.u32 %s712_s6, 4  ;;  %s344_s12 = int_to_ptr.vmem [resolvable:$true] %s343_s12 }
  0x16   : > { %v674_v1 = vshrl.u32 %v246_v0, 7  ;;  %s452_s26 = smul.u32 48, %s180_s23  ;;  %v692_v8 = vperm.slane %v445_v3, 0  ;;  %v698_v11 = vperm.slane %v445_v3, 1  ;;  %s533_s23 = sshra.s32 %s346_s18, 4  ;;  %s534_s23 = int_to_ptr.hbm [resolvable:$true] %s533_s23 }
  0x17   : > { %s535_s24 = scalar_lea.hbm %s534_s23, 48  ;;  %p540_p1 = scmp.lt.s32.totalorder %s534_s23, %s776_s2 }
  0x18   : > { %s186_s4 = scalar_lea.vmem %s774_s0, %s452_s26  ;;  %v248_v4 = vadd.s32 8, %v674_v1  ;;  %v249_v5 = vadd.s32 16, %v674_v1  ;;  %v254_v42 = vand.u32 1, %v674_v1  ;;  %p536_p12 = scmp.ne.s32.totalorder %s534_s23, %s535_s24 }
  0x19   : > { %v688_v6 = vld [vmem:[%s186_s4] sm:$0xff]  ;;  %v694_v9 = vld [vmem:[%s186_s4 + $0x8] sm:$0xff]  ;;  %v198_v15 = vld [vmem:[%s186_s4 + $0x10] sm:$0xff]  ;;  %p541_p2 = scmp.lt.s32.totalorder %s539_s27, %s535_s24 }
  0x1a   : > { %v202_v12 = vsub.f32 0.0, %v688_v6  ;;  %v203_v13 = vsub.f32 0.0, %v694_v9  ;;  %v261_v14 = vand.u32 1, %v248_v4  ;;  %v199_v16 = vld [vmem:[%s186_s4 + $0x18] sm:$0xff]  ;;  %v200_v17 = vld [vmem:[%s186_s4 + $0x20] sm:$0xf]  ;;  %p537_p13 = pnand %p536_p12, %p657_p4 }
  0x1b   : > { %v268_v18 = vand.u32 1, %v249_v5  ;;  %v201_v23 = vld [vmem:[%s186_s4 + $0x28] sm:$0xf]  ;;  %vm720_vm7 = vcmp.eq.s32.totalorder %v254_v42, 0  ;;  %p542_p3 = por %p541_p2, %p540_p1 }
  0x1c   : > { %v204_v19 = vmul.f32 1.442695, %v202_v12  ;;  %v206_v20 = vmul.f32 1.442695, %v203_v13  ;;  %vm287_vm0 = vcmp.eq.s32.totalorder %v261_v14, 0  ;;  %v305_v57 = vsel %vm720_vm7, %v690_v7, %v692_v8  ;;  %p538_p0 = pneg %p537_p13 }
  0x1d   : > { %v307_v21 = vsel %vm287_vm0, %v690_v7, %v692_v8  ;;  %v308_v22 = vsel %vm287_vm0, %v696_v10, %v698_v11  ;;  %vm288_vm1 = vcmp.eq.s32.totalorder %v268_v18, 0  ;;  %v306_v60 = vsel %vm720_vm7, %v696_v10, %v698_v11 }
  0x1e   : > { %511 = vpow2.f32 %v204_v19  ;;  %v313_v24 = vadd.f32 %v307_v21, %v198_v15  ;;  %v314_v25 = vadd.f32 %v308_v22, %v199_v16  ;;  %v309_v26 = vsel %vm288_vm1, %v690_v7, %v692_v8  ;;  %p543_p5 = pnand %p542_p3, %p538_p0 }
  0x1f   : > { %513 = vpow2.f32 %v206_v20  ;;  %v315_v27 = vadd.f32 %v309_v26, %v200_v17  ;;  %v310_v28 = vsel %vm288_vm1, %v696_v10, %v698_v11 }
  0x20   : > { %v319_v29 = vmul.f32 0.0625, %v313_v24  ;;  %v320_v30 = vmul.f32 0.0625, %v314_v25  ;;  %v316_v31 = vadd.f32 %v310_v28, %v201_v23 }
  0x21   : > { %v321_v32 = vmul.f32 0.0625, %v315_v27 }
  0x22   : > { %325 = vst [vmem:[%s712_s6 + $0x10] sm:$0xff] %v319_v29  ;;  %v322_v33 = vmul.f32 0.0625, %v316_v31 }
  0x23   : > { %326 = vst [vmem:[%s712_s6 + $0x18] sm:$0xff] %v320_v30 }
  0x24   : > { %v512_v34 = vpop.eup %511  ;;  %327 = vst [vmem:[%s712_s6 + $0x20] sm:$0x3] %v321_v32 }
  0x25   : > { %v514_v35 = vpop.eup %513  ;;  %v208_v36 = vadd.f32 1.0, %v512_v34  ;;  %328 = vst [vmem:[%s712_s6 + $0x28] sm:$0x3] %v322_v33 }
  0x26   : > { %v209_v37 = vadd.f32 1.0, %v514_v35 }
  0x27   : > { %515 = vrcp.f32 %v208_v36  ;;  %vm215_vm2 = vweird.f32 %v208_v36  ;;  %v221_v41 = vand.u32 2147483648, %v208_v36  ;;  %v219_v45 = vand.u32 2147483647, %v208_v36 }
  0x28   : > { %517 = vrcp.f32 %v209_v37  ;;  %v236_v46 = vand.u32 2147483648, %v209_v37  ;;  %vm230_vm4 = vweird.f32 %v209_v37  ;;  %v234_v48 = vand.u32 2147483647, %v209_v37 }
  0x29   : > { %v222_v50 = vor.u32 1.1754944e-38, %v221_v41  ;;  %vm220_vm8 = vcmp.eq.f32.partialorder %v219_v45, 8.507059e+37 }
  0x2a   : > { %v237_v54 = vor.u32 1.1754944e-38, %v236_v46  ;;  %vm235_vm11 = vcmp.eq.f32.partialorder %v234_v48, 8.507059e+37 }
  0x2d   : > { %v516_v38 = vpop.eup %515 }
  0x2e   : > { %v518_v39 = vpop.eup %517  ;;  %v211_v40 = vmul.f32 %v516_v38, %v208_v36  ;;  %vm216_vm3 = vweird.f32 %v516_v38 }
  0x2f   : > { %v226_v43 = vmul.f32 %v518_v39, %v209_v37  ;;  %vm231_vm5 = vweird.f32 %v518_v39  ;;  %vm217_vm6 = vmor %vm215_vm2, %vm216_vm3 }
  0x30   : > { %v212_v44 = vsub.f32 1.0, %v211_v40  ;;  %vm232_vm9 = vmor %vm230_vm4, %vm231_vm5 }
  0x31   : > { %v227_v47 = vsub.f32 1.0, %v226_v43 }
  0x32   : > { %v213_v49 = vmul.f32 %v516_v38, %v212_v44 }
  0x33   : > { %v228_v52 = vmul.f32 %v518_v39, %v227_v47 }
  0x34   : > { %v214_v53 = vadd.f32 %v516_v38, %v213_v49 }
  0x35   : > { %v229_v55 = vadd.f32 %v518_v39, %v228_v52 }
  0x36   : > { %v218_v56 = vsel %vm217_vm6, %v516_v38, %v214_v53 }
  0x37   : > { %v223_v58 = vsel %vm220_vm8, %v222_v50, %v218_v56  ;;  %v233_v59 = vsel %vm232_vm9, %v518_v39, %v229_v55 }
  0x38   : > { %v241_v61 = vsel %vm240_vm10, %v223_v58, %v688_v6  ;;  %v238_v62 = vsel %vm235_vm11, %v237_v54, %v233_v59 }
  0x39   : > { %v311_v63 = vadd.f32 %v305_v57, %v241_v61  ;;  %v242_v0 = vsel %vm240_vm10, %v238_v62, %v694_v9 }
  0x3a   : > { %v312_v1 = vadd.f32 %v306_v60, %v242_v0 }
  0x3b   : > { %v317_v2 = vmul.f32 0.0625, %v311_v63 }
  0x3c   : > { %v318_v3 = vmul.f32 0.0625, %v312_v1 }
  0x3d   : > { %323 = vst [vmem:[%s712_s6] sm:$0xff] %v317_v2 }
  0x3e   : > { %324 = vst [vmem:[%s712_s6 + $0x8] sm:$0xff] %v318_v3 }
  0x3f   : > { %546 = shalt.err (!%p543_p5)
}
  0x40   : > { %s599_s29 = smov 256   ;;  %s600_s3 = smov 512  }
  0x41   : > { %s601_s4 = smov 16  }
  0x42   : > { %453 = dma.vmem_to_hbm [thread:$0]  (%p657_p4), %s344_s12, 768, %s346_s18, %s330_s20, %s599_s29, %s600_s3, %s601_s4  }
  0x43 PF: > { %p459_p6 = scmp.ge.s32.totalorder %s597_s14, 2  ;;  %s360_s5 = sand.u32 1, %s577_s9  }
  0x44   : > { %s361_s6 = scalar_lea.sflag [#allocation3], %s360_s5 }
  0x45   : > { %p456_p7 = pnand %p459_p6, %p664_p8 }
  0x47   : > { %p457_p9 = pneg %p456_p7 }
  0x49   : > { %572 = dma.done.wait (%p457_p9), %s361_s6, 768  }
  0x4a   : > { %574 = vsyncadd (%p457_p9), %s361_s6, 4294966528  ;;  %s15_s14 = sadd.s32 1, %s597_s14   ;;  %s781_s9 = smov %s581_s10 }
  0x4b   : > { %p12_p10 = scmp.ge.s32.totalorder %s15_s14, 4   ;;  %s782_s10 = smov %s585_s11 }
  0x4c   : > { %s783_s11 = smov %s670_s22  ;;  %s784_s12 = smov %s593_s13 }
  0x4d   : > { %s785_s13 = smov %s787_s17  ;;  %14 = sbr.rel (!%p12_p10) target bundleno = 4 (0x4), region = 67 }
  0x52   :  { %367 = vsyncpa [#allocation3], 1 }
  0x53   :  { %369 = vsyncpa [#allocation3 + $0x1], 1 }

</bundles_post_ra>
